<compile_context>
chip_gen: v6e
topology: v6e:2x2x1
jax: 0.10.0
libtpu: 0.0.40
codegen_flags: <defaults>
</compile_context>

<pallas_src>
import functools

import jax
import jax.numpy as jnp
from jax.experimental import pallas as pl
from jax.experimental.pallas import tpu as pltpu


def _round_up(x: int, m: int) -> int:
    return ((x + m - 1) // m) * m


def _tile_bytes(rows: int, cols: int, itemsize: int) -> int:
    """VMEM footprint of a (rows, cols) tile with (8,128) physical tiling.

    Sub-32-bit dtypes pack along sublanes, so their minimum row granule is 16.
    """
    sub = 8 if itemsize >= 4 else 16
    return _round_up(max(rows, 1), sub) * _round_up(max(cols, 1), 128) * itemsize


def _shallow_nn_kernel(x_ref, w1_ref, b1_ref, w2_ref, b2_ref, o_ref, acc_ref,
                       *, negative_slope: float):
    """Fused MLP forward for one (batch tile, hidden tile) grid point.

    x_ref:  (TB, D)   input tile, stored dtype (cast in-kernel)
    w1_ref: (D, TH)   first linear weight slab (transposed), operand dtype
    b1_ref: (1, TH)   first linear bias (f32)
    w2_ref: (TH, O)   second linear weight slab (transposed), operand dtype
    b2_ref: (1, O)    second linear bias (f32)
    o_ref:  (TB, O)   output tile (true O; masked stores if O < 128)
    acc_ref:(TB, O)   f32 accumulator scratch (resident across the hidden axis)
    """
    h_idx = pl.program_id(1)

    @pl.when(h_idx == 0)
    def _():
        acc_ref[...] = jnp.zeros_like(acc_ref)

    # In-kernel cast: x DMA stays in its stored dtype (no wrapper HBM pass).
    x = x_ref[...].astype(w1_ref.dtype)
    # Linear 1 — f32 accumulation on the MXU, bias in f32.
    h = jnp.dot(x, w1_ref[...], preferred_element_type=jnp.float32) + b1_ref[...]
    # LeakyReLU (PyTorch default negative_slope = 0.01), element-wise per hidden
    # unit, so applying it per hidden tile is exact.
    h = jnp.where(h > 0, h, negative_slope * h)
    # Dropout(p=0.0) == Identity -> nothing to do.
    # Linear 2 — accumulate partial products over hidden tiles in f32.
    acc_ref[...] += jnp.dot(h.astype(w2_ref.dtype), w2_ref[...],
                            preferred_element_type=jnp.float32)

    @pl.when(h_idx == pl.num_programs(1) - 1)
    def _():
        y = acc_ref[...] + b2_ref[...]
        # Hardtanh: clamp to [-1, 1] in f32, then cast to output dtype.
        o_ref[...] = jnp.clip(y, -1.0, 1.0).astype(o_ref.dtype)


def shallow_nn_forward(x, w1, b1, w2, b2, *, block_batch=None,
                       negative_slope=0.01, operand_dtype=None):
    """Run the fused ShallowNN forward pass.

    x:  (B, D)
    w1: (D, H), b1: (H,)      (weights pre-transposed: in_features x out_features)
    w2: (H, O), b2: (O,)
    operand_dtype: optional matmul operand dtype (e.g. jnp.bfloat16 on v6e/v7x);
                   accumulation and all element-wise math stay f32.
    returns (B, O) in x.dtype
    """
    B, D = x.shape
    d_in, H = w1.shape
    h_in, O = w2.shape
    assert d_in == D and h_in == H, "weight shapes inconsistent with input"
    assert b1.shape == (H,) and b2.shape == (O,), "bias shapes inconsistent"

    x_dtype = jnp.dtype(x.dtype)
    op_dtype = jnp.dtype(operand_dtype) if operand_dtype is not None else x_dtype
    out_dtype = x_dtype
    x_item, op_item, out_item = x_dtype.itemsize, op_dtype.itemsize, out_dtype.itemsize

    # ---- chip-aware VMEM budget --------------------------------------------
    try:
        vmem_cap = int(pltpu.get_tpu_info().vmem_capacity_bytes)
    except Exception:
        vmem_cap = 64 * 1024 * 1024          # conservative fallback (v7x per-TC)
    vmem_budget = int(0.70 * vmem_cap)        # headroom for compiler scratch
    dual_tc = vmem_cap <= 64 * 1024 * 1024    # v7x-like chip: 2 TensorCores

    # ---- hidden-dim tiling fallback (weights too large for resident VMEM) ---
    def weight_vmem(th_):
        # BlockSpec inputs are double-buffered by default.
        return 2 * (_tile_bytes(D, th_, op_item) + _tile_bytes(th_, O, op_item)
                    + _tile_bytes(1, th_, 4) + _tile_bytes(1, O, 4))

    th = H
    if weight_vmem(th) > vmem_budget // 2:
        th = _round_up(H, 128)
        while th > 128 and weight_vmem(th) > vmem_budget // 2:
            th = max(128, _round_up(th // 2, 128))

    if th < H:
        # Zero-pad H to a multiple of th.  Exact: padded hidden units give
        # LeakyReLU(0 + 0) = 0 and multiply zero rows of w2.
        Hp = _round_up(H, th)
        w1 = jnp.pad(w1, ((0, 0), (0, Hp - H)))
        b1 = jnp.pad(b1, (0, Hp - H))
        w2 = jnp.pad(w2, ((0, Hp - H), (0, 0)))
    else:
        th = H
        Hp = H
    n_h = Hp // th

    # ---- batch tile (as big as the VMEM budget allows) -----------------------
    def vmem_estimate(tb_):
        io = 2 * (_tile_bytes(tb_, D, x_item) + _tile_bytes(tb_, O, out_item))  # dbl-buf x/out
        acc = _tile_bytes(tb_, O, 4)                                            # accumulator
        live = (_tile_bytes(tb_, D, op_item)          # in-kernel cast of x
                + 2 * _tile_bytes(tb_, th, 4))        # h intermediate (+ cast copy)
        return weight_vmem(th) + io + acc + live

    if block_batch is None:
        block_batch = 1024 if dual_tc else 2048       # v7x vs v5e/v6e default
    tb = max(8, min(_round_up(B, 8), _round_up(block_batch, 8)))
    while tb > 8 and vmem_estimate(tb) > vmem_budget:
        tb = max(8, _round_up(tb // 2, 8))
    # Dual-TC chips only: prefer >= 4 batch steps (>= 2 per core + pipelining).
    while dual_tc and tb > 8 and B > 8 and pl.cdiv(B, tb) < 4:
        tb = max(8, _round_up(tb // 2, 8))

    grid = (pl.cdiv(B, tb), n_h)

    # Weights/biases in operand dtype / f32 (one-time, tiny vs. activations).
    w1p = w1.astype(op_dtype)
    w2p = w2.astype(op_dtype)
    b1p = b1.reshape(1, Hp).astype(jnp.float32)
    b2p = b2.reshape(1, O).astype(jnp.float32)

    bytes_accessed = (B * D * x_item + D * Hp * op_item + Hp * O * op_item
                      + (Hp + O) * 4 + B * O * out_item)
    cost = pl.CostEstimate(
        flops=2 * B * (D * Hp + Hp * O),
        transcendentals=0,
        bytes_accessed=int(bytes_accessed),
    )

    est = vmem_estimate(tb)
    vmem_limit = int(min(int(0.90 * vmem_cap),
                         max(2 * est + (4 << 20), 32 * 1024 * 1024)))

    out = pl.pallas_call(
        functools.partial(_shallow_nn_kernel, negative_slope=negative_slope),
        out_shape=jax.ShapeDtypeStruct((B, O), out_dtype),
        grid=grid,
        in_specs=[
            pl.BlockSpec((tb, D), lambda i, h: (i, 0)),   # x: batch-tiled, ragged tail OK
            pl.BlockSpec((D, th), lambda i, h: (0, h)),   # w1 slab
            pl.BlockSpec((1, th), lambda i, h: (0, h)),   # b1 slab (f32)
            pl.BlockSpec((th, O), lambda i, h: (h, 0)),   # w2 slab
            pl.BlockSpec((1, O), lambda i, h: (0, 0)),    # b2 (f32)
        ],
        out_specs=pl.BlockSpec((tb, O), lambda i, h: (i, 0)),  # true-O output, no slice
        scratch_shapes=[pltpu.VMEM((tb, O), jnp.float32)],
        compiler_params=pltpu.CompilerParams(
            dimension_semantics=("parallel", "arbitrary"),
            vmem_limit_bytes=vmem_limit,
        ),
        cost_estimate=cost,
    )(x, w1p, b1p, w2p, b2p)

    return out


def init_shallow_nn_params(key, input_dim, hidden_dim=128, output_dim=None):
    """Deterministic init mirroring nn.Linear's U(-1/sqrt(fan_in), 1/sqrt(fan_in))."""
    output_dim = output_dim or input_dim
    k1, k2, k3, k4 = jax.random.split(key, 4)
    bound1 = 1.0 / jnp.sqrt(input_dim)
    bound2 = 1.0 / jnp.sqrt(hidden_dim)
    # Stored pre-transposed: (in_features, out_features)
    w1 = jax.random.uniform(k1, (input_dim, hidden_dim), jnp.float32,
                            minval=-bound1, maxval=bound1)
    b1 = jax.random.uniform(k2, (hidden_dim,), jnp.float32,
                            minval=-bound1, maxval=bound1)
    w2 = jax.random.uniform(k3, (hidden_dim, output_dim), jnp.float32,
                            minval=-bound2, maxval=bound2)
    b2 = jax.random.uniform(k4, (output_dim,), jnp.float32,
                            minval=-bound2, maxval=bound2)
    return w1, b1, w2, b2


def shallow_nn_ref(x, w1, b1, w2, b2, negative_slope=0.01):
    """Pure-JAX reference for correctness checking."""
    h = x @ w1 + b1
    h = jnp.where(h > 0, h, negative_slope * h)
    y = h @ w2 + b2
    return jnp.clip(y, -1.0, 1.0)


if __name__ == "__main__":
    key = jax.random.PRNGKey(0)
    kx, kp = jax.random.split(key)

    # Small shapes consistent with the module: (batch, input_dim) feature vectors.
    batch, input_dim, hidden_dim = 64, 32, 128
    x = jax.random.normal(kx, (batch, input_dim), jnp.float32)
    w1, b1, w2, b2 = init_shallow_nn_params(kp, input_dim, hidden_dim)

    ref = shallow_nn_ref(x, w1, b1, w2, b2)

    # f32 path.
    out = jax.block_until_ready(shallow_nn_forward(x, w1, b1, w2, b2))
    assert out.shape == (batch, input_dim)
    assert jnp.allclose(out, ref, atol=1e-5, rtol=1e-5), "f32 mismatch vs reference"

    # Batch not divisible by 8 / tile: exercises the ragged-tail (no-pad) path.
    out_odd = jax.block_until_ready(shallow_nn_forward(x[:37], w1, b1, w2, b2))
    assert out_odd.shape == (37, input_dim)
    assert jnp.allclose(out_odd, ref[:37], atol=1e-5, rtol=1e-5), "odd-batch mismatch"

    # bf16 operand path (v6e/v7x MXU); f32 accumulation keeps error small.
    out_bf16 = jax.block_until_ready(
        shallow_nn_forward(x, w1, b1, w2, b2, operand_dtype=jnp.bfloat16))
    assert jnp.allclose(out_bf16, ref, atol=5e-2, rtol=5e-2), "bf16 mismatch vs reference"

    print("KERNEL_OK")
</pallas_src>

<mosaic_0001>
module attributes {stable_mosaic.version = 11 : i64} {
  func.func @_shallow_nn_kernel(%arg0: i32, %arg1: i32, %arg2: memref<16x32xf32, #tpu.memory_space<vmem>>, %arg3: memref<32x128xf32, #tpu.memory_space<vmem>>, %arg4: memref<1x128xf32, #tpu.memory_space<vmem>>, %arg5: memref<128x32xf32, #tpu.memory_space<vmem>>, %arg6: memref<1x32xf32, #tpu.memory_space<vmem>>, %arg7: memref<16x32xf32, #tpu.memory_space<vmem>>, %arg8: memref<16x32xf32, #tpu.memory_space<vmem>>) attributes {dimension_semantics = [#tpu.dimension_semantics<parallel>, #tpu.dimension_semantics<arbitrary>], iteration_bounds = array<i64: 4, 1>, scalar_prefetch = 0 : i64, scratch_operands = 1 : i64, tpu.core_type = #tpu.core_type<tc>, window_params = [{transform_indices = @transform_0, window_bounds = array<i64: 16, 32>}, {transform_indices = @transform_1, window_bounds = array<i64: 32, 128>}, {transform_indices = @transform_2, window_bounds = array<i64: 1, 128>}, {transform_indices = @transform_3, window_bounds = array<i64: 128, 32>}, {pipeline_mode = #tpu.pipeline_mode<synchronous>, transform_indices = @transform_4, window_bounds = array<i64: 1, 32>}, {transform_indices = @transform_5, window_bounds = array<i64: 16, 32>}]} {
    %c0_i32 = arith.constant 0 : i32
    %0 = arith.cmpi eq, %arg1, %c0_i32 : i32
    %1 = arith.extui %0 : i1 to i32
    %c0_i32_0 = arith.constant 0 : i32
    %2 = arith.cmpi ne, %1, %c0_i32_0 : i32
    scf.if %2 {
      %cst_17 = arith.constant 0.000000e+00 : f32
      %22 = vector.broadcast %cst_17 : f32 to vector<16x32xf32>
      %c0_18 = arith.constant 0 : index
      %c0_19 = arith.constant 0 : index
      %23 = vector.load %arg8[%c0_18, %c0_19] : memref<16x32xf32, #tpu.memory_space<vmem>>, vector<16x32xf32>
      tpu.vector_store %arg8[%c0_18, %c0_19], %22 {strides = array<i32>} : memref<16x32xf32, #tpu.memory_space<vmem>>, vector<16x32xf32>,
    } else {
    }
    %c0 = arith.constant 0 : index
    %c0_1 = arith.constant 0 : index
    %3 = vector.load %arg2[%c0, %c0_1] : memref<16x32xf32, #tpu.memory_space<vmem>>, vector<16x32xf32>
    %c0_2 = arith.constant 0 : index
    %c0_3 = arith.constant 0 : index
    %4 = vector.load %arg3[%c0_2, %c0_3] : memref<32x128xf32, #tpu.memory_space<vmem>>, vector<32x128xf32>
    %cst = arith.constant dense<0.000000e+00> : vector<16x128xf32>
    %5 = tpu.matmul %3, %4, %cst {dimension_numbers = #tpu.dot_dimension_numbers<[1], [0], [0], [1], [0, 0, 1, 1], [], []>} : vector<16x32xf32>, vector<32x128xf32>, vector<16x128xf32> -> vector<16x128xf32>
    %c0_4 = arith.constant 0 : index
    %c0_5 = arith.constant 0 : index
    %6 = vector.load %arg4[%c0_4, %c0_5] : memref<1x128xf32, #tpu.memory_space<vmem>>, vector<1x128xf32>
    %7 = vector.broadcast %6 : vector<1x128xf32> to vector<16x128xf32>
    %8 = arith.addf %5, %7 : vector<16x128xf32>
    %cst_6 = arith.constant 0.000000e+00 : f32
    %9 = vector.broadcast %cst_6 : f32 to vector<16x128xf32>
    %10 = arith.cmpf ogt, %8, %9 : vector<16x128xf32>
    %cst_7 = arith.constant 0.00999999977 : f32
    %11 = vector.broadcast %cst_7 : f32 to vector<16x128xf32>
    %12 = arith.mulf %11, %8 : vector<16x128xf32>
    %13 = arith.select %10, %8, %12 : vector<16x128xi1>, vector<16x128xf32>
    %c0_8 = arith.constant 0 : index
    %c0_9 = arith.constant 0 : index
    %14 = vector.load %arg8[%c0_8, %c0_9] : memref<16x32xf32, #tpu.memory_space<vmem>>, vector<16x32xf32>
    %c0_10 = arith.constant 0 : index
    %c0_11 = arith.constant 0 : index
    %15 = vector.load %arg5[%c0_10, %c0_11] : memref<128x32xf32, #tpu.memory_space<vmem>>, vector<128x32xf32>
    %cst_12 = arith.constant dense<0.000000e+00> : vector<16x32xf32>
    %16 = tpu.matmul %13, %15, %cst_12 {dimension_numbers = #tpu.dot_dimension_numbers<[1], [0], [0], [1], [0, 0, 1, 1], [], []>} : vector<16x128xf32>, vector<128x32xf32>, vector<16x32xf32> -> vector<16x32xf32>
    %17 = arith.addf %14, %16 : vector<16x32xf32>
    %c0_13 = arith.constant 0 : index
    %c0_14 = arith.constant 0 : index
    %18 = vector.load %arg8[%c0_13, %c0_14] : memref<16x32xf32, #tpu.memory_space<vmem>>, vector<16x32xf32>
    tpu.vector_store %arg8[%c0_13, %c0_14], %17 {strides = array<i32>} : memref<16x32xf32, #tpu.memory_space<vmem>>, vector<16x32xf32>,
    %c0_i32_15 = arith.constant 0 : i32
    %19 = arith.cmpi eq, %arg1, %c0_i32_15 : i32
    %20 = arith.extui %19 : i1 to i32
    %c0_i32_16 = arith.constant 0 : i32
    %21 = arith.cmpi ne, %20, %c0_i32_16 : i32
    scf.if %21 {
      %c0_17 = arith.constant 0 : index
      %c0_18 = arith.constant 0 : index
      %22 = vector.load %arg8[%c0_17, %c0_18] : memref<16x32xf32, #tpu.memory_space<vmem>>, vector<16x32xf32>
      %c0_19 = arith.constant 0 : index
      %c0_20 = arith.constant 0 : index
      %23 = vector.load %arg6[%c0_19, %c0_20] : memref<1x32xf32, #tpu.memory_space<vmem>>, vector<1x32xf32>
      %24 = vector.broadcast %23 : vector<1x32xf32> to vector<16x32xf32>
      %25 = arith.addf %22, %24 : vector<16x32xf32>
      %cst_21 = arith.constant -1.000000e+00 : f32
      %cst_22 = arith.constant 1.000000e+00 : f32
      %26 = vector.broadcast %cst_21 : f32 to vector<16x32xf32>
      %27 = arith.maximumf %26, %25 : vector<16x32xf32>
      %28 = vector.broadcast %cst_22 : f32 to vector<16x32xf32>
      %29 = arith.minimumf %28, %27 : vector<16x32xf32>
      %c0_23 = arith.constant 0 : index
      %c0_24 = arith.constant 0 : index
      %30 = vector.load %arg7[%c0_23, %c0_24] : memref<16x32xf32, #tpu.memory_space<vmem>>, vector<16x32xf32>
      tpu.vector_store %arg7[%c0_23, %c0_24], %29 {strides = array<i32>} : memref<16x32xf32, #tpu.memory_space<vmem>>, vector<16x32xf32>,
    } else {
    }
    return
  }
  func.func @transform_0(%arg0: i32, %arg1: i32) -> (i32, i32) {
    %c0_i32 = arith.constant 0 : i32
    %c0_i32_0 = arith.constant 0 : i32
    return %arg0, %c0_i32 : i32, i32
  }
  func.func @transform_1(%arg0: i32, %arg1: i32) -> (i32, i32) {
    %c0_i32 = arith.constant 0 : i32
    %c0_i32_0 = arith.constant 0 : i32
    return %c0_i32, %arg1 : i32, i32
  }
  func.func @transform_2(%arg0: i32, %arg1: i32) -> (i32, i32) {
    %c0_i32 = arith.constant 0 : i32
    %c0_i32_0 = arith.constant 0 : i32
    return %c0_i32, %arg1 : i32, i32
  }
  func.func @transform_3(%arg0: i32, %arg1: i32) -> (i32, i32) {
    %c0_i32 = arith.constant 0 : i32
    %c0_i32_0 = arith.constant 0 : i32
    return %arg1, %c0_i32 : i32, i32
  }
  func.func @transform_4(%arg0: i32, %arg1: i32) -> (i32, i32) {
    %c0_i32 = arith.constant 0 : i32
    %c0_i32_0 = arith.constant 0 : i32
    %c0_i32_1 = arith.constant 0 : i32
    return %c0_i32, %c0_i32_0 : i32, i32
  }
  func.func @transform_5(%arg0: i32, %arg1: i32) -> (i32, i32) {
    %c0_i32 = arith.constant 0 : i32
    %c0_i32_0 = arith.constant 0 : i32
    return %arg0, %c0_i32 : i32, i32
  }
}

</mosaic_0001>

<bundles_post_ra>
// kernel: tpu_custom_call.1
= control target key start
LH: loop header
LB: loop body
LE: loop exit
PB: predicated region body
PF: predicated region fallthrough
CT: control target
= control target key end

     0   :  { %s795_s18 = smov 0   ;;  %s797_s19 = smov 0   ;;  %s909_s0 = inlined_call_operand.vmem [shape: f32[64,32], index: 0, kind: input, shape index: {}]   ;;  %s910_s1 = inlined_call_operand.vmem [shape: f32[32,128], index: 1, kind: input, shape index: {}]   ;;  %s911_s2 = inlined_call_operand.vmem [shape: f32[1,128], index: 2, kind: input, shape index: {}]   ;;  %s912_s3 = inlined_call_operand.vmem [shape: f32[128,32], index: 3, kind: input, shape index: {}]   ;;  %s913_s4 = inlined_call_operand.vmem [shape: f32[1,32], index: 4, kind: input, shape index: {}]   ;;  %s914_s5 = inlined_call_operand.vmem [shape: f32[64,32], index: 5, kind: output, shape index: {}]  }
   0x1   :  { %s799_s20 = smov 0  }
   0x2 LB: > { %s27_s21 = sadd.s32 1, %s758_s19  ;;  %p632_p0 = scmp.ge.s32.totalorder %s762_s20, 1  ;;  %s762_s20 = sphi %s799_s20, %s15_s20   ;;  %s758_s19 = sphi %s797_s19, %s916_s19   ;;  %s754_s18 = sphi %s795_s18, %s915_s18  }
   0x3   : > { %p29_p1 = scmp.ge.s32.totalorder %s27_s21, 4  ;;  %p228_p2 = scmp.lt.s32.totalorder %s762_s20, 5 }
   0x5   : > { %s918_s21 = smov (%p29_p1, %s27_s21), 0  ;;  %p229_p3 = pnand %p632_p0, %p228_p2 }
   0x6   : > { %s633_s26 = sshll.u32 (!%p229_p3), %s754_s18, 1 }
   0x7   : > { %232 = sbr.rel (%p229_p3) target bundleno = 432 (0x1b0), region = 40  ;;  %p269_p4 = scmp.lt.s32.totalorder (!%p229_p3), %s633_s26, 7 }
   0xc   : > { %v305_v0 = vld [vmem:[%s910_s1 + $0x18] sm:$0xff]  ;;  %v304_v1 = vld [vmem:[%s910_s1 + $0x10] sm:$0xff]  ;;  %v303_v4 = vld [vmem:[%s910_s1 + $0x8] sm:$0xff]  ;;  %s920_s26 = smov (!%p269_p4, %s633_s26), 7  ;;  %vm297_vm0 = vcmask 261120   ;;  %v764_v22 = vmov 0.0  }
   0xd   : > { %669 = vmatprep.subr.mxu0 %v305_v0  ;;  %v418_v2 = vld [vmem:[%s912_s3 + $0x78] sm:$0xff]  ;;  %v417_v3 = vld [vmem:[%s912_s3 + $0x70] sm:$0xff]  ;;  %v416_v5 = vld [vmem:[%s912_s3 + $0x68] sm:$0xff]  ;;  %s634_s12 = sshll.u32 %s920_s26, 3  ;;  %299 = vst.msk [vmem:[#allocation2 + $0x8] sm:$0xff] %vm297_vm0, %v764_v22 }
   0xe   : > { %670 = vmatpush3.msra.mxu0 %v305_v0  ;;  %680 = vmatprep.subr.mxu1 %v418_v2  ;;  %v302_v6 = vld [vmem:[%s910_s1] sm:$0xff]  ;;  %s272_s15 = scalar_lea.vmem %s909_s0, %s634_s12  ;;  %v414_v10 = vld [vmem:[%s912_s3 + $0x58] sm:$0xff]  ;;  %v413_v11 = vld [vmem:[%s912_s3 + $0x50] sm:$0xff]  ;;  %298 = vst.msk [vmem:[#allocation2] sm:$0xff] %vm297_vm0, %v764_v22  ;;  %s291_s7 = scalar_lea.vmem %s914_s5, %s634_s12 }
   0xf   : > { %671 = vmatprep.subr.mxu0 %v304_v1  ;;  %681 = vmatpush3.msra.mxu1 %v418_v2  ;;  %v415_v7 = vld [vmem:[%s912_s3 + $0x60] sm:$0xff]  ;;  %v301_v9 = vld [vmem:[%s272_s15 + $0x8] sm:$0xff]  ;;  %v410_v14 = vld [vmem:[%s912_s3 + $0x38] sm:$0xff] }
  0x10   : > { %672 = vmatpush3.msra.mxu0 %v304_v1  ;;  %682 = vmatprep.subr.mxu1 %v417_v3  ;;  %v300_v8 = vld [vmem:[%s272_s15] sm:$0xff]  ;;  %v412_v12 = vld [vmem:[%s912_s3 + $0x48] sm:$0xff]  ;;  %v409_v15 = vld [vmem:[%s912_s3 + $0x30] sm:$0xff] }
  0x11   : > { %673 = vmatprep.subr.mxu0 %v303_v4  ;;  %683 = vmatpush3.msra.mxu1 %v417_v3  ;;  %v411_v13 = vld [vmem:[%s912_s3 + $0x40] sm:$0xff]  ;;  %v408_v16 = vld [vmem:[%s912_s3 + $0x28] sm:$0xff]  ;;  %v406_v18 = vld [vmem:[%s912_s3 + $0x18] sm:$0xff] }
  0x12   : > { %674 = vmatpush3.msra.mxu0 %v303_v4  ;;  %684 = vmatprep.subr.mxu1 %v416_v5  ;;  %v407_v17 = vld [vmem:[%s912_s3 + $0x20] sm:$0xff]  ;;  %v405_v19 = vld [vmem:[%s912_s3 + $0x10] sm:$0xff]  ;;  %v404_v20 = vld [vmem:[%s912_s3 + $0x8] sm:$0xff] }
  0x13   : > { %675 = vmatprep.subr.mxu0 %v302_v6  ;;  %685 = vmatpush3.msra.mxu1 %v416_v5  ;;  %v403_v21 = vld [vmem:[%s912_s3] sm:$0xff] }
  0x14   : > { %676 = vmatpush3.msra.mxu0 %v302_v6  ;;  %677 = vmatprep.mubr.msk.f32.mxu0 %vm297_vm0, %v300_v8  ;;  %v637_v23 = vld [vmem:[%s911_s2] ss:$0 sm:$0xff]  ;;  %v402_v32 = vld [vmem:[#allocation2 + $0x8] sm:$0xff] }
  0x15   : > { %678 = vmatmul.mubr.msk.f32.vlgmr.msra.gmra.mxu0 %vm297_vm0, %v301_v9  ;;  %686 = vmatprep.subr.mxu1 %v415_v7  ;;  %v401_v34 = vld [vmem:[#allocation2] sm:$0xff] }
  0x16   : > { %687 = vmatpush3.msra.mxu1 %v415_v7  ;;  %v640_v38 = vld [vmem:[%s913_s4] ss:$0 sm:$0xff] }
  0x17   : > { %688 = vmatprep.subr.mxu1 %v414_v10 }
  0x18   : > { %689 = vmatpush3.msra.mxu1 %v414_v10 }
  0x19   : > { %690 = vmatprep.subr.mxu1 %v413_v11 }
  0x1a   : > { %691 = vmatpush3.msra.mxu1 %v413_v11 }
  0x1b   : > { %692 = vmatprep.subr.mxu1 %v412_v12 }
  0x1c   : > { %693 = vmatpush3.msra.mxu1 %v412_v12 }
  0x1d   : > { %694 = vmatprep.subr.mxu1 %v411_v13 }
  0x1e   : > { %695 = vmatpush3.msra.mxu1 %v411_v13 }
  0x1f   : > { %696 = vmatprep.subr.mxu1 %v410_v14 }
  0x20   : > { %697 = vmatpush3.msra.mxu1 %v410_v14 }
  0x21   : > { %698 = vmatprep.subr.mxu1 %v409_v15 }
  0x22   : > { %699 = vmatpush3.msra.mxu1 %v409_v15 }
  0x23   : > { %700 = vmatprep.subr.mxu1 %v408_v16 }
  0x24   : > { %701 = vmatpush3.msra.mxu1 %v408_v16 }
  0x25   : > { %702 = vmatprep.subr.mxu1 %v407_v17 }
  0x26   : > { %703 = vmatpush3.msra.mxu1 %v407_v17 }
  0x27   : > { %704 = vmatprep.subr.mxu1 %v406_v18 }
  0x28   : > { %705 = vmatpush3.msra.mxu1 %v406_v18 }
  0x29   : > { %706 = vmatprep.subr.mxu1 %v405_v19 }
  0x2a   : > { %707 = vmatpush3.msra.mxu1 %v405_v19 }
  0x2b   : > { %708 = vmatprep.subr.mxu1 %v404_v20 }
  0x2c   : > { %709 = vmatpush3.msra.mxu1 %v404_v20 }
  0x2d   : > { %710 = vmatprep.subr.mxu1 %v403_v21 }
  0x2e   : > { %711 = vmatpush3.msra.mxu1 %v403_v21 }
  0xd5   : > { %v679_v24 = vpop.f32.mrf.mxu0 }
  0xd6   : > { %v392_v25 = vadd.f32 %v679_v24, %v637_v23 }
  0xd7   : > { %v386_v26 = vpop.f32.mrf.mxu0 }
  0xd8   : > { %v387_v27 = vadd.f32 %v637_v23, %v386_v26  ;;  %v398_v28 = vmul.f32 0.01, %v392_v25  ;;  %vm396_vm2 = vcmp.gt.f32.partialorder %v392_v25, 0.0 }
  0xda   : > { %vm395_vm1 = vcmp.gt.f32.partialorder %v387_v27, 0.0  ;;  %v397_v29 = vmul.f32 0.01, %v387_v27  ;;  %v400_v31 = vsel %vm396_vm2, %v392_v25, %v398_v28 }
  0xdc   : > { %v399_v30 = vsel %vm395_vm1, %v387_v27, %v397_v29 }
  0xdd   : > { %712 = vmatprep.mubr.f32.mxu1 %v399_v30 }
  0xde   : > { %713 = vmatmul.mubr.f32.vlgmr.msra.gmra.mxu1 %v400_v31 }
 0x19e   : > { %v714_v33 = vpop.f32.mrf.mxu1 }
 0x19f   : > { %v495_v35 = vadd.f32 %v714_v33, %v402_v32 }
 0x1a0   : > { %v485_v36 = vpop.f32.mrf.mxu1 }
 0x1a1   : > { %497 = vst.msk [vmem:[#allocation2 + $0x8] sm:$0xff] %vm297_vm0, %v495_v35  ;;  %v494_v37 = vadd.f32 %v485_v36, %v401_v34 }
 0x1a3   : > { %496 = vst.msk [vmem:[#allocation2] sm:$0xff] %vm297_vm0, %v494_v37 }
 0x1a8   : > { %v502_v39 = vld [vmem:[#allocation2 + $0x8] sm:$0xff] }
 0x1a9   : > { %v511_v40 = vadd.f32 %v640_v38, %v502_v39 }
 0x1aa   : > { %v501_v41 = vld [vmem:[#allocation2] sm:$0xff] }
 0x1ab   : > { %v510_v42 = vadd.f32 %v640_v38, %v501_v41  ;;  %v642_v44 = vclamps-f32 %v511_v40, 1.0 }
 0x1ad   : > { %v641_v43 = vclamps-f32 %v510_v42, 1.0  ;;  %517 = vst.msk [vmem:[%s291_s7 + $0x8] sm:$0xff] %vm297_vm0, %v642_v44 }
 0x1af   : > { %516 = vst.msk [vmem:[%s291_s7] sm:$0xff] %vm297_vm0, %v641_v43 }
 0x1b0 PF: > { %s15_s20 = sadd.s32 1, %s762_s20   ;;  %s915_s18 = smov %s758_s19 }
 0x1b1   : > { %p12_p5 = scmp.ge.s32.totalorder %s15_s20, 6   ;;  %s916_s19 = smov %s918_s21 }
 0x1b3   :  { %14 = sbr.rel (!%p12_p5) target bundleno = 2 (0x2), region = 87 }

</bundles_post_ra>
